<compile_context>
chip_gen: v6e
topology: v6e:2x2x1
jax: 0.10.0
libtpu: 0.0.40
codegen_flags: <defaults>
</compile_context>

<pallas_src>
import functools

import jax
import jax.numpy as jnp
from jax.experimental import pallas as pl
from jax.experimental.pallas import tpu as pltpu


_LANES = 128                 # vreg lane width
_MAX_ROWS_PER_TILE = 1024    # 1024*128*4B = 512 KiB per input tile (well under VMEM)


def _combined_loss_kernel(x_ref,       # (tile_rows, 128) VMEM block of `output`
                          y_ref,       # (tile_rows, 128) VMEM block of `target`
                          loss_ref,    # (1, 1) SMEM scalar result
                          acc_sq,      # VMEM (1, 128) per-lane running sum of squares
                          acc_abs,     # VMEM (1, 128) per-lane running sum of abs
                          *,
                          weight_mse, weight_l1, inv_n):
    i = pl.program_id(0)

    @pl.when(i == 0)
    def _():
        acc_sq[...] = jnp.zeros_like(acc_sq)
        acc_abs[...] = jnp.zeros_like(acc_abs)

    d = x_ref[...] - y_ref[...]
    # Sublane-only reductions keep the accumulation fully vectorized (cheap XLU).
    acc_sq[...] += jnp.sum(d * d, axis=0, keepdims=True)
    acc_abs[...] += jnp.sum(jnp.abs(d), axis=0, keepdims=True)

    @pl.when(i == pl.num_programs(0) - 1)
    def _():
        total = (weight_mse * jnp.sum(acc_sq[...])
                 + weight_l1 * jnp.sum(acc_abs[...]))
        loss_ref[0, 0] = total * inv_n


def combined_loss(output, target, weight_mse=0.5, weight_l1=0.5):
    """Pallas equivalent of CombinedLoss.forward(output, target)."""
    if output.shape != target.shape:
        raise ValueError("output and target must have the same shape")
    n = int(output.size)

    x = jnp.ravel(output).astype(jnp.float32)
    y = jnp.ravel(target).astype(jnp.float32)

    # Pad to a lane-dense (rows, 128) slab; zero padding contributes 0 to both sums.
    lane_pad = (-n) % _LANES
    if lane_pad:
        x = jnp.pad(x, (0, lane_pad))
        y = jnp.pad(y, (0, lane_pad))
    rows = (n + lane_pad) // _LANES

    if rows <= _MAX_ROWS_PER_TILE:
        tile_rows = rows           # single grid step: whole array is one block
        num_tiles = 1
    else:
        tile_rows = _MAX_ROWS_PER_TILE
        row_pad = (-rows) % tile_rows
        if row_pad:
            x = jnp.pad(x, (0, row_pad * _LANES))
            y = jnp.pad(y, (0, row_pad * _LANES))
            rows += row_pad
        num_tiles = rows // tile_rows

    x2 = x.reshape(rows, _LANES)
    y2 = y.reshape(rows, _LANES)

    kernel = functools.partial(
        _combined_loss_kernel,
        weight_mse=float(weight_mse),
        weight_l1=float(weight_l1),
        inv_n=1.0 / float(n),
    )

    grid_spec = pltpu.PrefetchScalarGridSpec(
        num_scalar_prefetch=0,
        grid=(num_tiles,),
        in_specs=[
            pl.BlockSpec((tile_rows, _LANES), lambda i: (i, 0)),
            pl.BlockSpec((tile_rows, _LANES), lambda i: (i, 0)),
        ],
        out_specs=pl.BlockSpec(memory_space=pltpu.MemorySpace.SMEM),
        scratch_shapes=[
            pltpu.VMEM((1, _LANES), jnp.float32),
            pltpu.VMEM((1, _LANES), jnp.float32),
        ],
    )

    cost = pl.CostEstimate(
        flops=5 * n,               # sub, square, abs, two accumulating adds
        transcendentals=0,
        bytes_accessed=2 * n * 4 + 4,
    )

    loss = pl.pallas_call(
        kernel,
        out_shape=jax.ShapeDtypeStruct((1, 1), jnp.float32),
        grid_spec=grid_spec,
        compiler_params=pltpu.CompilerParams(
            dimension_semantics=("arbitrary",)),   # accumulator carried across tiles
        cost_estimate=cost,
    )(x2, y2)

    return loss[0, 0]


def _reference_combined_loss(output, target, weight_mse=0.5, weight_l1=0.5):
    o = output.astype(jnp.float32)
    t = target.astype(jnp.float32)
    mse = jnp.mean((o - t) ** 2)
    l1 = jnp.mean(jnp.abs(o - t))
    return weight_mse * mse + weight_l1 * l1


if __name__ == "__main__":
    # Small shapes consistent with the shallow-water training loop:
    # model output / target fields of shape (batch, vars, N_fine, N_fine).
    B, C, H, W = 2, 4, 16, 16
    key = jax.random.PRNGKey(0)
    k1, k2 = jax.random.split(key)
    output = jax.random.normal(k1, (B, C, H, W), dtype=jnp.float32)
    target = jax.random.normal(k2, (B, C, H, W), dtype=jnp.float32)

    loss = combined_loss(output, target, weight_mse=0.5, weight_l1=0.5)
    loss = jax.block_until_ready(loss)

    ref = _reference_combined_loss(output, target, 0.5, 0.5)
    assert loss.shape == ()
    assert jnp.allclose(loss, ref, rtol=1e-5, atol=1e-6), (loss, ref)

    # Also exercise a non-128-multiple shape to check the padding path.
    o2 = jax.random.normal(k1, (3, 7, 11), dtype=jnp.float32)
    t2 = jax.random.normal(k2, (3, 7, 11), dtype=jnp.float32)
    loss2 = jax.block_until_ready(combined_loss(o2, t2, 0.3, 0.7))
    ref2 = _reference_combined_loss(o2, t2, 0.3, 0.7)
    assert jnp.allclose(loss2, ref2, rtol=1e-5, atol=1e-6), (loss2, ref2)

    print("KERNEL_OK")
</pallas_src>

<mosaic_0001>
module attributes {stable_mosaic.version = 11 : i64} {
  func.func @_combined_loss_kernel(%arg0: i32, %arg1: memref<16x128xf32, #tpu.memory_space<vmem>>, %arg2: memref<16x128xf32, #tpu.memory_space<vmem>>, %arg3: memref<1x1xf32, #tpu.memory_space<smem>>, %arg4: memref<1x128xf32, #tpu.memory_space<vmem>>, %arg5: memref<1x128xf32, #tpu.memory_space<vmem>>) attributes {dimension_semantics = [#tpu.dimension_semantics<arbitrary>], iteration_bounds = array<i64: 1>, scalar_prefetch = 0 : i64, scratch_operands = 2 : i64, tpu.core_type = #tpu.core_type<tc>, window_params = [{transform_indices = @transform_0, window_bounds = array<i64: 16, 128>}, {transform_indices = @transform_1, window_bounds = array<i64: 16, 128>}, {transform_indices = @transform_2, window_bounds = array<i64: 1, 1>}]} {
    %c0_i32 = arith.constant 0 : i32
    %0 = arith.cmpi eq, %arg0, %c0_i32 : i32
    %1 = arith.extui %0 : i1 to i32
    %c0_i32_0 = arith.constant 0 : i32
    %2 = arith.cmpi ne, %1, %c0_i32_0 : i32
    scf.if %2 {
      %cst_15 = arith.constant 0.000000e+00 : f32
      %21 = vector.broadcast %cst_15 : f32 to vector<1x128xf32>
      %c0_16 = arith.constant 0 : index
      %c0_17 = arith.constant 0 : index
      %22 = vector.load %arg4[%c0_16, %c0_17] : memref<1x128xf32, #tpu.memory_space<vmem>>, vector<1x128xf32>
      tpu.vector_store %arg4[%c0_16, %c0_17], %21 {strides = array<i32>} : memref<1x128xf32, #tpu.memory_space<vmem>>, vector<1x128xf32>,
      %cst_18 = arith.constant 0.000000e+00 : f32
      %23 = vector.broadcast %cst_18 : f32 to vector<1x128xf32>
      %c0_19 = arith.constant 0 : index
      %c0_20 = arith.constant 0 : index
      %24 = vector.load %arg5[%c0_19, %c0_20] : memref<1x128xf32, #tpu.memory_space<vmem>>, vector<1x128xf32>
      tpu.vector_store %arg5[%c0_19, %c0_20], %23 {strides = array<i32>} : memref<1x128xf32, #tpu.memory_space<vmem>>, vector<1x128xf32>,
    } else {
    }
    %c0 = arith.constant 0 : index
    %c0_1 = arith.constant 0 : index
    %3 = vector.load %arg1[%c0, %c0_1] : memref<16x128xf32, #tpu.memory_space<vmem>>, vector<16x128xf32>
    %c0_2 = arith.constant 0 : index
    %c0_3 = arith.constant 0 : index
    %4 = vector.load %arg2[%c0_2, %c0_3] : memref<16x128xf32, #tpu.memory_space<vmem>>, vector<16x128xf32>
    %5 = arith.subf %3, %4 : vector<16x128xf32>
    %c0_4 = arith.constant 0 : index
    %c0_5 = arith.constant 0 : index
    %6 = vector.load %arg4[%c0_4, %c0_5] : memref<1x128xf32, #tpu.memory_space<vmem>>, vector<1x128xf32>
    %7 = arith.mulf %5, %5 : vector<16x128xf32>
    %cst = arith.constant dense<0.000000e+00> : vector<128xf32>
    %8 = vector.multi_reduction <add>, %7, %cst [0] : vector<16x128xf32> to vector<128xf32>
    %9 = vector.shape_cast %8 : vector<128xf32> to vector<1x128xf32>
    %10 = arith.addf %6, %9 : vector<1x128xf32>
    %c0_6 = arith.constant 0 : index
    %c0_7 = arith.constant 0 : index
    %11 = vector.load %arg4[%c0_6, %c0_7] : memref<1x128xf32, #tpu.memory_space<vmem>>, vector<1x128xf32>
    tpu.vector_store %arg4[%c0_6, %c0_7], %10 {strides = array<i32>} : memref<1x128xf32, #tpu.memory_space<vmem>>, vector<1x128xf32>,
    %c0_8 = arith.constant 0 : index
    %c0_9 = arith.constant 0 : index
    %12 = vector.load %arg5[%c0_8, %c0_9] : memref<1x128xf32, #tpu.memory_space<vmem>>, vector<1x128xf32>
    %13 = math.absf %5 : vector<16x128xf32>
    %cst_10 = arith.constant dense<0.000000e+00> : vector<128xf32>
    %14 = vector.multi_reduction <add>, %13, %cst_10 [0] : vector<16x128xf32> to vector<128xf32>
    %15 = vector.shape_cast %14 : vector<128xf32> to vector<1x128xf32>
    %16 = arith.addf %12, %15 : vector<1x128xf32>
    %c0_11 = arith.constant 0 : index
    %c0_12 = arith.constant 0 : index
    %17 = vector.load %arg5[%c0_11, %c0_12] : memref<1x128xf32, #tpu.memory_space<vmem>>, vector<1x128xf32>
    tpu.vector_store %arg5[%c0_11, %c0_12], %16 {strides = array<i32>} : memref<1x128xf32, #tpu.memory_space<vmem>>, vector<1x128xf32>,
    %c0_i32_13 = arith.constant 0 : i32
    %18 = arith.cmpi eq, %arg0, %c0_i32_13 : i32
    %19 = arith.extui %18 : i1 to i32
    %c0_i32_14 = arith.constant 0 : i32
    %20 = arith.cmpi ne, %19, %c0_i32_14 : i32
    scf.if %20 {
      %c0_15 = arith.constant 0 : index
      %c0_16 = arith.constant 0 : index
      %21 = vector.load %arg4[%c0_15, %c0_16] : memref<1x128xf32, #tpu.memory_space<vmem>>, vector<1x128xf32>
      %22 = vector.shape_cast %21 : vector<1x128xf32> to vector<1x1x128xf32>
      %cst_17 = arith.constant dense<0.000000e+00> : vector<1xf32>
      %23 = vector.multi_reduction <add>, %22, %cst_17 [1, 2] : vector<1x1x128xf32> to vector<1xf32>
      %24 = vector.shape_cast %23 : vector<1xf32> to vector<1x1x1xf32>
      %25 = vector.extract %24[0, 0, 0] : f32 from vector<1x1x1xf32>
      %cst_18 = arith.constant 5.000000e-01 : f32
      %26 = arith.mulf %cst_18, %25 : f32
      %c0_19 = arith.constant 0 : index
      %c0_20 = arith.constant 0 : index
      %27 = vector.load %arg5[%c0_19, %c0_20] : memref<1x128xf32, #tpu.memory_space<vmem>>, vector<1x128xf32>
      %28 = vector.shape_cast %27 : vector<1x128xf32> to vector<1x1x128xf32>
      %cst_21 = arith.constant dense<0.000000e+00> : vector<1xf32>
      %29 = vector.multi_reduction <add>, %28, %cst_21 [1, 2] : vector<1x1x128xf32> to vector<1xf32>
      %30 = vector.shape_cast %29 : vector<1xf32> to vector<1x1x1xf32>
      %31 = vector.extract %30[0, 0, 0] : f32 from vector<1x1x1xf32>
      %cst_22 = arith.constant 5.000000e-01 : f32
      %32 = arith.mulf %cst_22, %31 : f32
      %33 = arith.addf %26, %32 : f32
      %cst_23 = arith.constant 4.8828125E-4 : f32
      %34 = arith.mulf %33, %cst_23 : f32
      %c0_24 = arith.constant 0 : index
      %c0_25 = arith.constant 0 : index
      %35 = memref.load %arg3[%c0_24, %c0_25] : memref<1x1xf32, #tpu.memory_space<smem>>
      memref.store %34, %arg3[%c0_24, %c0_25] : memref<1x1xf32, #tpu.memory_space<smem>>
    } else {
    }
    return
  }
  func.func @transform_0(%arg0: i32) -> (i32, i32) {
    %c0_i32 = arith.constant 0 : i32
    %c0_i32_0 = arith.constant 0 : i32
    return %arg0, %c0_i32 : i32, i32
  }
  func.func @transform_1(%arg0: i32) -> (i32, i32) {
    %c0_i32 = arith.constant 0 : i32
    %c0_i32_0 = arith.constant 0 : i32
    return %arg0, %c0_i32 : i32, i32
  }
  func.func @transform_2(%arg0: i32) -> (i32, i32) {
    %c0_i32 = arith.constant 0 : i32
    %c0_i32_0 = arith.constant 0 : i32
    %c0_i32_1 = arith.constant 0 : i32
    return %c0_i32, %c0_i32_0 : i32, i32
  }
}

</mosaic_0001>

<bundles_post_ra>
// kernel: tpu_custom_call.1
= control target key start
LH: loop header
LB: loop body
LE: loop exit
PB: predicated region body
PF: predicated region fallthrough
CT: control target
= control target key end

     0   :  { %7 = vsyncpa [#allocation5], 0  ;;  %s217_s0 = inlined_call_operand.hbm [shape: f32[16,128], index: 0, kind: input, shape index: {}]   ;;  %s218_s1 = inlined_call_operand.hbm [shape: f32[16,128], index: 1, kind: input, shape index: {}]   ;;  %s219_s2 = inlined_call_operand.hbm [shape: f32[1,1], index: 2, kind: output, shape index: {}]  }
   0x1   :  { %8 = vsyncpa [#allocation8], 0 }
   0x2   :  { %9 = vsyncpa [#allocation6], 0  ;;  %s187_s9 = smov [#allocation4]  }
   0x3   :  { %s15_s10 = sshll.u32 %s187_s9, 4  ;;  %s16_s10 = int_to_ptr.vmem [resolvable:$true] %s15_s10 }
   0x4   :  { %s141_s11 = scalar_lea.vmem %s16_s10, 256  ;;  %p146_p1 = scmp.lt.s32.totalorder %s16_s10, %s16_s10 }
   0x5   :  { %p142_p0 = scmp.ne.s32.totalorder %s16_s10, %s141_s11  ;;  %p147_p2 = scmp.lt.s32.totalorder %s141_s11, %s141_s11 }
   0x7   :  { %p148_p3 = por %p147_p2, %p146_p1 }
   0x9   :  { %p149_p4 = pnand %p148_p3, %p142_p0 }
   0xb   :  { %152 = shalt.err (!%p149_p4)
}
   0xc   :  { %s188_s12 = smov 128   ;;  %s189_s13 = smov 8  }
   0xd   :  { %21 = dma.hbm_to_vmem [thread:$0]  %s217_s0, 256, %s16_s10, [#allocation5], %s188_s12, %s188_s12, %s189_s13  }
   0xe   :  { %s190_s16 = smov [#allocation7]  }
   0xf   :  { %s27_s17 = sshll.u32 %s190_s16, 4  ;;  %s28_s17 = int_to_ptr.vmem [resolvable:$true] %s27_s17 }
  0x10   :  { %s161_s18 = scalar_lea.vmem %s28_s17, 256  ;;  %p166_p6 = scmp.lt.s32.totalorder %s28_s17, %s28_s17 }
  0x11   :  { %p162_p5 = scmp.ne.s32.totalorder %s28_s17, %s161_s18  ;;  %p167_p7 = scmp.lt.s32.totalorder %s161_s18, %s161_s18 }
  0x13   :  { %p168_p8 = por %p167_p7, %p166_p6 }
  0x15   :  { %p169_p9 = pnand %p168_p8, %p162_p5 }
  0x17   :  { %172 = shalt.err (!%p169_p9)
}
  0x18   :  { %33 = dma.hbm_to_vmem [thread:$0]  %s218_s1, 256, %s28_s17, [#allocation8], %s188_s12, %s188_s12, %s189_s13  }
  0x19   :  { %181 = dma.done.wait [#allocation5], 256  }
  0x1a   :  { %182 = vsyncadd [#allocation5], 4294967040 }
  0x1b   :  { %183 = dma.done.wait [#allocation8], 256  }
  0x1c   :  { %184 = vsyncadd [#allocation8], 4294967040  ;;  %v191_v0 = vmov 0.0   ;;  %v46_v1 = vld [vmem:[#allocation4] sm:$0xff]  ;;  %v47_v2 = vld [vmem:[#allocation4 + $0x8] sm:$0xff]  ;;  %vm80_vm0 = vcmask 1040384  }
  0x1d   :  { %44 = vst [vmem:[#allocation2] sm:$0x1] %v191_v0  ;;  %45 = vst [vmem:[#allocation3] sm:$0x1] %v191_v0  ;;  %v48_v3 = vld [vmem:[#allocation7] sm:$0xff]  ;;  %v49_v4 = vld [vmem:[#allocation7 + $0x8] sm:$0xff] }
  0x1e   :  { %v50_v5 = vsub.f32 %v46_v1, %v48_v3  ;;  %v51_v6 = vsub.f32 %v47_v2, %v49_v4  ;;  %s192_s25 = smov [#allocation9]  }
  0x20   :  { %v53_v7 = vmul.f32 %v50_v5, %v50_v5  ;;  %v65_v8 = vand.u32 2147483647, %v50_v5  ;;  %v54_v9 = vmul.f32 %v51_v6, %v51_v6  ;;  %v66_v10 = vand.u32 2147483647, %v51_v6 }
  0x22   :  { %v55_v11 = vadd.f32 %v54_v9, %v53_v7  ;;  %v67_v12 = vadd.f32 %v66_v10, %v65_v8 }
  0x24   :  { %v56_v13 = vrot.slane %v55_v11, 4  ;;  %v68_v14 = vrot.slane %v67_v12, 4  ;;  %v52_v23 = vld [vmem:[#allocation2] sm:$0x1]  ;;  %v64_v24 = vld [vmem:[#allocation3] sm:$0x1] }
  0x26   :  { %v57_v15 = vadd.f32 %v56_v13, %v55_v11  ;;  %v69_v16 = vadd.f32 %v68_v14, %v67_v12 }
  0x28   :  { %v58_v17 = vrot.slane %v57_v15, 2  ;;  %v70_v18 = vrot.slane %v69_v16, 2 }
  0x2a   :  { %v59_v19 = vadd.f32 %v58_v17, %v57_v15  ;;  %v71_v20 = vadd.f32 %v70_v18, %v69_v16 }
  0x2c   :  { %v60_v21 = vrot.slane %v59_v19, 1  ;;  %v72_v22 = vrot.slane %v71_v20, 1 }
  0x2e   :  { %v61_v25 = vadd.f32 %v60_v21, %v59_v19  ;;  %v73_v26 = vadd.f32 %v72_v22, %v71_v20 }
  0x30   :  { %v62_v27 = vadd.f32 %v61_v25, %v52_v23  ;;  %v74_v28 = vadd.f32 %v73_v26, %v64_v24 }
  0x32   :  { %63 = vst [vmem:[#allocation2] sm:$0x1] %v62_v27  ;;  %75 = vst [vmem:[#allocation3] sm:$0x1] %v74_v28 }
  0x39   :  { %v79_v29 = vld [vmem:[#allocation2] sm:$0x1]  ;;  %v92_v30 = vld [vmem:[#allocation3] sm:$0x1] }
  0x3a   :  { %v81_v31 = vsel %vm80_vm0, %v79_v29, 0.0  ;;  %v93_v32 = vsel %vm80_vm0, %v92_v30, 0.0 }
  0x3b   :  { %82 = vadd.xlane.f32.xlu0 %v81_v31 }
  0x3f   :  { %94 = vadd.xlane.f32.xlu0 %v93_v32 }
  0xc4   :  { %v83_v33 = vpop.xlane.xlu0 %82 }
  0xc5   :  { %v84_v34 = vrot.slane %v83_v33, 4 }
  0xc7   :  { %v85_v35 = vadd.f32 %v84_v34, %v83_v33 }
  0xc8   :  { %v95_v36 = vpop.xlane.xlu0 %94 }
  0xc9   :  { %v86_v37 = vrot.slane %v85_v35, 2  ;;  %v96_v38 = vrot.slane %v95_v36, 4 }
  0xcb   :  { %v97_v39 = vadd.f32 %v96_v38, %v95_v36  ;;  %v87_v40 = vadd.f32 %v86_v37, %v85_v35 }
  0xcd   :  { %v98_v41 = vrot.slane %v97_v39, 2  ;;  %v88_v42 = vrot.slane %v87_v40, 1 }
  0xcf   :  { %v99_v43 = vadd.f32 %v98_v41, %v97_v39  ;;  %v89_v44 = vadd.f32 %v88_v42, %v87_v40 }
  0xd1   :  { %123 = vpush %v89_v44  ;;  %v100_v45 = vrot.slane %v99_v43, 1 }
  0xd3   :  { %v101_v46 = vadd.f32 %v100_v45, %v99_v43 }
  0xd5   :  { %125 = vpush %v101_v46 }
 0x102   :  { %s124_s0 = spop %123 }
 0x103   :  { %s91_s1 = smul.f32 0.5, %s124_s0 }
 0x106   :  { %s126_s21 = spop %125 }
 0x107   :  { %s103_s22 = smul.f32 0.5, %s126_s21 }
 0x109   :  { %s104_s23 = sadd.f32 %s103_s22, %s91_s1 }
 0x10b   :  { %s105_s24 = smul.f32 0.00048828125, %s104_s23 }
 0x10d   :  { %107 = sst [smem:[#allocation9]] %s105_s24 }
 0x10e   :  { %115 = dma.smem_to_hbm %s192_s25, 16, %s219_s2, [#allocation6]  }
 0x10f   :  { %185 = dma.done.wait [#allocation6], 16  }
 0x110   :  { %186 = vsyncadd [#allocation6], 4294967280 }
 0x111   :  { %119 = sfence }
 0x112   :  { %120 = vsyncpa [#allocation5], 1 }
 0x113   :  { %121 = vsyncpa [#allocation8], 1 }
 0x114   :  { %122 = vsyncpa [#allocation6], 1 }

</bundles_post_ra>
